<compile_context>
chip_gen: v6e
topology: v6e:2x2x1
jax: 0.10.0
libtpu: 0.0.40
codegen_flags: <defaults>
</compile_context>

<pallas_src>
import functools

import jax
import jax.numpy as jnp
from jax.experimental import pallas as pl
from jax.experimental.pallas import tpu as pltpu


def _spatial_softmax_kernel(z_ref, o_ref, *, width, activation):
    # Block is (Bt, C, L): batch tile, channels on sublanes, positions on lanes.
    z = z_ref[...].astype(jnp.float32)
    if activation == 'exp':
        a = jnp.exp(z)
    elif activation == 'abs':
        a = jnp.abs(z) + 1e-9
    else:
        raise RuntimeError(f'Invalid activation: {activation}')

    bt, _, L = z.shape
    r = width // 2

    # Per-position sum over all channels (sublane reduce): (Bt, 1, L).
    s = jnp.sum(a, axis=1, keepdims=True)

    # width-tap sliding-window sum along the lane (position) axis with zero
    # padding at the sequence ends: `width` shifted adds on an O(L) array.
    if r > 0:
        zpad = jnp.zeros((bt, 1, r), jnp.float32)
        sp = jnp.concatenate([zpad, s, zpad], axis=-1)     # (Bt, 1, L + 2r)
    else:
        sp = s
    denom = sp[..., 0:L]
    for k in range(1, width):
        denom = denom + sp[..., k:k + L]

    # One reciprocal per position, broadcast over the C sublanes.
    inv = pl.reciprocal(denom, approx=False)
    o_ref[...] = (z * a * inv).astype(o_ref.dtype)


def spatial_softmax(z, width, activation='exp', block_b=None):
    """Pallas TPU implementation of SpatialSoftmax.forward.  z: (B, L, C)."""
    assert width % 2 == 1
    B, L, C = z.shape

    # Lane-dense layout: run the kernel in NCL so L maps to the 128-lane axis.
    z_ncl = jnp.transpose(z, (0, 2, 1))                    # (B, C, L)

    if block_b is None:
        itemsize = jnp.dtype(z.dtype).itemsize
        per_batch = max(C * L * itemsize, 1)
        block_b = max(1, (512 * 1024) // per_batch)        # ~512 KiB per tile
        if B >= 2:
            block_b = min(block_b, B // 2)                 # >=2 steps (v7x megacore)
        block_b = max(1, min(block_b, B))
        while B % block_b:                                 # make it a divisor of B
            block_b -= 1

    kernel = functools.partial(
        _spatial_softmax_kernel, width=width, activation=activation)

    out_ncl = pl.pallas_call(
        kernel,
        out_shape=jax.ShapeDtypeStruct((B, C, L), z.dtype),
        grid=(B // block_b,),
        in_specs=[pl.BlockSpec((block_b, C, L), lambda b: (b, 0, 0))],
        out_specs=pl.BlockSpec((block_b, C, L), lambda b: (b, 0, 0)),
        compiler_params=pltpu.CompilerParams(
            dimension_semantics=("parallel",)),
    )(z_ncl)

    return jnp.transpose(out_ncl, (0, 2, 1))               # back to (B, L, C)


def spatial_softmax_ref(z, width, activation='exp'):
    """Pure-JAX reference mirroring the PyTorch module exactly."""
    if activation == 'exp':
        a = jnp.exp(z)
    elif activation == 'abs':
        a = jnp.abs(z) + 1e-9
    else:
        raise RuntimeError(f'Invalid activation: {activation}')
    B, L, C = z.shape
    r = width // 2
    s = jnp.sum(a, axis=-1, keepdims=True)                 # (B, L, 1)
    s_pad = jnp.pad(s, ((0, 0), (r, r), (0, 0)))
    denom = sum(s_pad[:, k:k + L, :] for k in range(width))  # (B, L, 1)
    return z * a / denom


if __name__ == "__main__":
    # Small deterministic example: batch=2, seq_len=16, channels=8.
    key = jax.random.PRNGKey(0)
    B, L, C = 2, 16, 8
    z = jax.random.normal(key, (B, L, C), dtype=jnp.float32)

    # exp activation, width=3
    out = jax.block_until_ready(spatial_softmax(z, 3, activation='exp'))
    ref = spatial_softmax_ref(z, 3, activation='exp')
    assert out.shape == ref.shape and out.dtype == ref.dtype
    assert jnp.allclose(out, ref, rtol=1e-5, atol=1e-6), "mismatch (exp, w=3)"

    # abs activation, width=7 (exercises the wider windowed sum + end padding)
    out = jax.block_until_ready(spatial_softmax(z, 7, activation='abs'))
    ref = spatial_softmax_ref(z, 7, activation='abs')
    assert jnp.allclose(out, ref, rtol=1e-5, atol=1e-6), "mismatch (abs, w=7)"

    print("KERNEL_OK")
</pallas_src>

<mosaic_0001>
module attributes {stable_mosaic.version = 11 : i64} {
  func.func @_spatial_softmax_kernel(%arg0: i32, %arg1: memref<1x8x16xf32, #tpu.memory_space<vmem>>, %arg2: memref<1x8x16xf32, #tpu.memory_space<vmem>>) attributes {dimension_semantics = [#tpu.dimension_semantics<parallel>], iteration_bounds = array<i64: 2>, scalar_prefetch = 0 : i64, scratch_operands = 0 : i64, tpu.core_type = #tpu.core_type<tc>, window_params = [{transform_indices = @transform_0, window_bounds = array<i64: 1, 8, 16>}, {transform_indices = @transform_1, window_bounds = array<i64: 1, 8, 16>}]} {
    %c0 = arith.constant 0 : index
    %c0_0 = arith.constant 0 : index
    %c0_1 = arith.constant 0 : index
    %0 = vector.load %arg1[%c0, %c0_0, %c0_1] : memref<1x8x16xf32, #tpu.memory_space<vmem>>, vector<1x8x16xf32>
    %1 = math.exp %0 : vector<1x8x16xf32>
    %cst = arith.constant dense<0.000000e+00> : vector<1x16xf32>
    %2 = vector.multi_reduction <add>, %1, %cst [1] : vector<1x8x16xf32> to vector<1x16xf32>
    %3 = vector.shape_cast %2 : vector<1x16xf32> to vector<1x1x16xf32>
    %cst_2 = arith.constant 0.000000e+00 : f32
    %4 = vector.broadcast %cst_2 : f32 to vector<1x1x1xf32>
    %5 = tpu.concatenate %4, %3, %4 in 2 : vector<1x1x1xf32>, vector<1x1x16xf32>, vector<1x1x1xf32> -> vector<1x1x18xf32>
    %6 = vector.extract_strided_slice %5 {offsets = [0, 0, 0], sizes = [1, 1, 16], strides = [1, 1, 1]} : vector<1x1x18xf32> to vector<1x1x16xf32>
    %7 = vector.extract_strided_slice %5 {offsets = [0, 0, 1], sizes = [1, 1, 16], strides = [1, 1, 1]} : vector<1x1x18xf32> to vector<1x1x16xf32>
    %8 = arith.addf %6, %7 : vector<1x1x16xf32>
    %9 = vector.extract_strided_slice %5 {offsets = [0, 0, 2], sizes = [1, 1, 16], strides = [1, 1, 1]} : vector<1x1x18xf32> to vector<1x1x16xf32>
    %10 = arith.addf %8, %9 : vector<1x1x16xf32>
    %11 = tpu.reciprocal %10 : vector<1x1x16xf32> -> vector<1x1x16xf32>
    %12 = arith.mulf %0, %1 : vector<1x8x16xf32>
    %13 = vector.broadcast %11 : vector<1x1x16xf32> to vector<1x8x16xf32>
    %14 = arith.mulf %12, %13 : vector<1x8x16xf32>
    %c0_3 = arith.constant 0 : index
    %c0_4 = arith.constant 0 : index
    %c0_5 = arith.constant 0 : index
    %15 = vector.load %arg2[%c0_3, %c0_4, %c0_5] : memref<1x8x16xf32, #tpu.memory_space<vmem>>, vector<1x8x16xf32>
    tpu.vector_store %arg2[%c0_3, %c0_4, %c0_5], %14 {strides = array<i32>} : memref<1x8x16xf32, #tpu.memory_space<vmem>>, vector<1x8x16xf32>,
    return
  }
  func.func @transform_0(%arg0: i32) -> (i32, i32, i32) {
    %c0_i32 = arith.constant 0 : i32
    %c0_i32_0 = arith.constant 0 : i32
    %c0_i32_1 = arith.constant 0 : i32
    return %arg0, %c0_i32, %c0_i32_0 : i32, i32, i32
  }
  func.func @transform_1(%arg0: i32) -> (i32, i32, i32) {
    %c0_i32 = arith.constant 0 : i32
    %c0_i32_0 = arith.constant 0 : i32
    %c0_i32_1 = arith.constant 0 : i32
    return %arg0, %c0_i32, %c0_i32_0 : i32, i32, i32
  }
}

</mosaic_0001>

<bundles_post_ra>
// kernel: tpu_custom_call.1
= control target key start
LH: loop header
LB: loop body
LE: loop exit
PB: predicated region body
PF: predicated region fallthrough
CT: control target
= control target key end

     0   :  { %6 = vsyncpa [#allocation3], 0  ;;  %s573_s0 = inlined_call_operand.hbm [shape: f32[2,8,16], index: 0, kind: input, shape index: {}]   ;;  %s574_s1 = inlined_call_operand.hbm [shape: f32[2,8,16], index: 1, kind: output, shape index: {}]  }
   0x1   :  { %8 = vsyncpa [#allocation3 + $0x1], 0 }
   0x2   :  { %9 = vsyncpa [#allocation4], 0 }
   0x3   :  { %11 = vsyncpa [#allocation4 + $0x1], 0  ;;  %s426_s6 = smov 0   ;;  %s428_s7 = smov 0  }
   0x4   :  { %s430_s8 = smov 0   ;;  %s432_s9 = smov 0  }
   0x5 LB: > { %s447_s10 = sadd.s32 4294967295, %s409_s9   ;;  %s252_s11 = sadd.s32 4294967294, %s409_s9   ;;  %s409_s9 = sphi %s432_s9, %s591_s9   ;;  %s405_s8 = sphi %s430_s8, %s590_s8   ;;  %s401_s7 = sphi %s428_s7, %s589_s7   ;;  %s397_s6 = sphi %s426_s6, %s588_s6  }
   0x6   : > { %s451_s12 = sadd.s32 1, %s409_s9   ;;  %s24_s13 = sadd.s32 1, %s405_s8 }
   0x7   : > { %s21_s14 = ssub.s32 %s409_s9, %s451_s12  ;;  %p31_p0 = scmp.ne.s32.totalorder %s405_s8, %s401_s7 }
   0x8   : > { %p22_p1 = scmp.eq.s32.totalorder %s21_s14, 0  ;;  %p32_p2 = scmp.eq.s32.totalorder %s409_s9, 0 }
   0x9   : > { %p37_p3 = scmp.ne.s32.totalorder %s401_s7, %s397_s6  ;;  %p38_p4 = scmp.eq.s32.totalorder %s447_s10, 0 }
   0xa   : > { %s463_s15 = scalar_select %p22_p1, %s405_s8, %s24_s13  }
   0xb   : > { %p465_p5 = por %p32_p2, %p31_p0  ;;  %p469_p6 = por %p38_p4, %p37_p3 }
   0xc   : > { %p61_p7 = scmp.eq.s32.totalorder %s447_s10, 1  ;;  %p67_p8 = scmp.eq.s32.totalorder %s252_s11, 1 }
   0xd   : > { %s578_s17 = scalar_select %p469_p6, 1, 0 }
   0xe   : > { %p276_p10 = scmp.lt.s32.totalorder %s409_s9, 2  ;;  %p476_p11 = por %p61_p7, %p31_p0 }
   0xf   : > { %p480_p12 = por %p67_p8, %p37_p3  ;;  %s87_s20 = sand.u32 1, %s405_s8  }
  0x10   : > { %s579_s18 = scalar_select %p476_p11, 1, 0 }
  0x11   : > { %s580_s19 = scalar_select %p480_p12, 1, 0 }
  0x12   : > { %s256_s21 = sshll.u32 %s409_s9, 7  ;;  %s255_s22 = sshll.u32 %s87_s20, 3 }
  0x13   : > { %s489_s25 = scalar_lea.hbm %s573_s0, %s256_s21  ;;  %s91_s26 = scalar_lea.vmem [#allocation2], %s255_s22 }
  0x14   : > { %s98_s27 = sshll.u32 %s91_s26, 4  ;;  %p493_p13 = pnand %p276_p10, %p465_p5  ;;  %s497_s27 = int_to_ptr.vmem [resolvable:$true] %s98_s27 }
  0x15   : > { %s88_s29 = scalar_lea.sflag [#allocation3], %s87_s20  ;;  %s317_s30 = scalar_lea.hbm %s489_s25, 128 }
  0x16   : > { %p318_p2 = scmp.ne.s32.totalorder %s489_s25, %s317_s30  ;;  %p319_p3 = pneg %p493_p13 }
  0x17   : > { %s322_s4 = scalar_lea.hbm %s573_s0, 256  ;;  %p323_p5 = scmp.lt.s32.totalorder %s489_s25, %s573_s0 }
  0x18   : > { %p320_p4 = pnand %p319_p3, %p318_p2  ;;  %p324_p8 = scmp.lt.s32.totalorder %s322_s4, %s317_s30 }
  0x1a   : > { %p321_p7 = pneg %p320_p4  ;;  %p325_p10 = por %p324_p8, %p323_p5 }
  0x1c   : > { %p326_p9 = pnand %p325_p10, %p321_p7 }
  0x1e   : > { %329 = shalt.err (!%p326_p9)
}
  0x1f   : > { %s330_s13 = scalar_lea.vmem %s497_s27, 128  ;;  %s411_s14 = smov [#allocation2]  }
  0x20   : > { %p331_p0 = scmp.ne.s32.totalorder %s497_s27, %s330_s13  ;;  %s335_s16 = sshll.u32 %s411_s14, 4  ;;  %s336_s16 = int_to_ptr.vmem [resolvable:$false] %s335_s16 }
  0x21   : > { %s337_s20 = scalar_lea.vmem %s336_s16, 256  ;;  %p338_p4 = scmp.lt.s32.totalorder %s497_s27, %s336_s16 }
  0x22   : > { %p333_p1 = pnand %p331_p0, %p319_p3  ;;  %p339_p12 = scmp.lt.s32.totalorder %s337_s20, %s330_s13 }
  0x24   : > { %p334_p2 = pneg %p333_p1  ;;  %p340_p11 = por %p339_p12, %p338_p4 }
  0x26   : > { %p341_p6 = pnand %p340_p11, %p334_p2 }
  0x28   : > { %344 = shalt.err (!%p341_p6)
}
  0x29   : > { %271 = dma.hbm_to_vmem [thread:$0]  (!%p493_p13), %s489_s25, 128, %s497_s27, %s88_s29  }
  0x2a   : > { %p582_p9 = scmp.lt.s32.totalorder %s409_s9, 3  ;;  %p583_p7 = scmp.ge.s32.totalorder %s409_s9, 1 }
  0x2c   : > { %p104_p0 = pnand %p583_p7, %p582_p9 }
  0x2d   : > { %s524_s21 = sand.u32 (!%p104_p0), 1, %s401_s7   ;;  %p584_p6 = scmp.ne.s32.totalorder (!%p104_p0), %s578_s17, 0 }
  0x2e   : > { %107 = sbr.rel (%p104_p0) target bundleno = 349 (0x15d), region = 24  ;;  %s258_s22 = sshll.u32 (!%p104_p0), %s524_s21, 3 }
  0x2f   : > { %s110_s23 = scalar_lea.sflag (!%p104_p0), [#allocation3], %s524_s21  ;;  %s113_s24 = scalar_lea.vmem (!%p104_p0), [#allocation2], %s258_s22 }
  0x33   : > { %388 = dma.done.wait (%p584_p6), %s110_s23, 128  }
  0x34   : > { %390 = vsyncadd (%p584_p6), %s110_s23, 4294967168  ;;  %v132_v0 = vld [vmem:[%s113_s24] sm:$0xff]  ;;  %vm135_vm0 = vcmask 130048   ;;  %s412_s25 = smov 1   ;;  %vm147_vm1 = vcmask 7168   ;;  %vm149_vm2 = vcmask 138240   ;;  %v162_v17 = vlaneseq }
  0x35   : > { %v133_v1 = vmul.f32 1.442695, %v132_v0  ;;  %s413_s17 = smov 126   ;;  %s414_s26 = smov 127  }
  0x36   : > { %v163_v18 = vshrl.u32 %v162_v17, 7  ;;  %s261_s27 = sshll.u32 %s447_s10, 7  ;;  %s131_s28 = scalar_lea.vmem [#allocation5], %s258_s22 }
  0x37   : > { %313 = vpow2.f32 %v133_v1  ;;  %s182_s29 = sshll.u32 %s131_s28, 4  ;;  %s180_s3 = scalar_lea.hbm %s574_s1, %s261_s27  ;;  %s183_s29 = int_to_ptr.vmem [resolvable:$true] %s182_s29 }
  0x38   : > { %v164_v19 = vsub.s32 0, %v163_v18  ;;  %s169_s4 = scalar_lea.sflag [#allocation4], %s524_s21  ;;  %s345_s5 = scalar_lea.vmem %s183_s29, 128 }
  0x39   : > { %p346_p11 = scmp.ne.s32.totalorder %s183_s29, %s345_s5  ;;  %p585_p12 = scmp.ne.s32.totalorder %s579_s18, 0 }
  0x3a   : > { %s415_s11 = smov [#allocation5]  }
  0x3b   : > { %p347_p13 = pnand %p346_p11, %p585_p12  ;;  %s349_s10 = sshll.u32 %s415_s11, 4  ;;  %s350_s10 = int_to_ptr.vmem [resolvable:$false] %s349_s10 }
  0x3c   : > { %s351_s13 = scalar_lea.vmem %s350_s10, 256  ;;  %p352_p3 = scmp.lt.s32.totalorder %s183_s29, %s350_s10 }
  0x3d   : > { %p348_p1 = pneg %p347_p13  ;;  %p353_p5 = scmp.lt.s32.totalorder %s351_s13, %s345_s5 }
  0x3f   : > { %p354_p8 = por %p353_p5, %p352_p3 }
  0x41   : > { %p355_p10 = pnand %p354_p8, %p348_p1 }
  0x44   : > { %v314_v2 = vpop.eup %313 }
  0x45   : > { %v136_v3 = vsel %vm135_vm0, %v314_v2, 0.0  ;;  %v161_v20 = vmul.f32 %v314_v2, %v132_v0 }
  0x46   : > { %v137_v4 = vrot.slane %v136_v3, 4 }
  0x48   : > { %v138_v5 = vadd.f32 %v137_v4, %v136_v3 }
  0x4a   : > { %v139_v6 = vrot.slane %v138_v5, 2 }
  0x4c   : > { %v140_v7 = vadd.f32 %v139_v6, %v138_v5 }
  0x4e   : > { %v141_v8 = vrot.slane %v140_v7, 1 }
  0x50   : > { %v142_v9 = vadd.f32 %v141_v8, %v140_v7 }
  0x52   : > { %144 = vrot.lane.b32.xlu0 %v142_v9, %s412_s25 }
  0xc4   : > { %v145_v10 = vpop.permute.xlu0 %144 }
  0xc5   : > { %v148_v11 = vsel %vm147_vm1, 0.0, %v145_v10 }
  0xc6   : > { %v150_v12 = vsel %vm149_vm2, %v148_v11, 0.0 }
  0xc7   : > { %156 = vrot.lane.b32.xlu1 %v150_v12, %s413_s17  ;;  %152 = vrot.lane.b32.xlu0 %v150_v12, %s414_s26 }
 0x139   : > { %v153_v13 = vpop.permute.xlu0 %152  ;;  %v157_v15 = vpop.permute.xlu1 %156 }
 0x13a   : > { %v155_v14 = vadd.f32 %v153_v13, %v150_v12 }
 0x13c   : > { %v159_v16 = vadd.f32 %v157_v15, %v155_v14 }
 0x13e   : > { %315 = vrcp.f32 %v159_v16 }
 0x14b   : > { %v316_v21 = vpop.eup %315 }
 0x14c   : > { %v165_v22 = vrot.slane %v316_v21, %v164_v19 }
 0x14e   : > { %v166_v23 = vmul.f32 %v165_v22, %v161_v20 }
 0x150   : > { %167 = vst.msk [vmem:[%s131_s28] sm:$0xff] %vm135_vm0, %v166_v23 }
 0x151   : > { %358 = shalt.err (!%p355_p10)
}
 0x152   : > { %s359_s14 = scalar_lea.hbm %s180_s3, 128  ;;  %s363_s21 = scalar_lea.hbm %s574_s1, 256 }
 0x153   : > { %p360_p2 = scmp.ne.s32.totalorder %s180_s3, %s359_s14  ;;  %p364_p7 = scmp.lt.s32.totalorder %s180_s3, %s574_s1 }
 0x154   : > { %p365_p0 = scmp.lt.s32.totalorder %s363_s21, %s359_s14 }
 0x155   : > { %p361_p4 = pnand %p360_p2, %p585_p12 }
 0x156   : > { %p366_p6 = por %p365_p0, %p364_p7 }
 0x157   : > { %p362_p9 = pneg %p361_p4 }
 0x159   : > { %p367_p11 = pnand %p366_p6, %p362_p9 }
 0x15b   : > { %370 = shalt.err (!%p367_p11)
}
 0x15c   : > { %266 = dma.vmem_to_hbm [thread:$0]  (%p585_p12), %s183_s29, 128, %s180_s3, %s169_s4  }
 0x15d PF: > { %s194_s24 = sand.u32 1, %s397_s6   ;;  %p586_p13 = scmp.ne.s32.totalorder %s580_s19, 0 }
 0x15e   : > { %p587_p1 = scmp.ge.s32.totalorder %s409_s9, 2  ;;  %s195_s25 = scalar_lea.sflag [#allocation4], %s194_s24 }
 0x160   : > { %p273_p3 = pnand %p587_p1, %p586_p13 }
 0x162   : > { %p274_p5 = pneg %p273_p3 }
 0x164   : > { %392 = dma.done.wait (%p274_p5), %s195_s25, 128  }
 0x165   : > { %394 = vsyncadd (%p274_p5), %s195_s25, 4294967168  ;;  %p14_p8 = scmp.ge.s32.totalorder %s451_s12, 4   ;;  %s588_s6 = smov %s401_s7 }
 0x166   : > { %s589_s7 = smov %s405_s8  ;;  %s590_s8 = smov %s463_s15 }
 0x167   : > { %s591_s9 = smov %s451_s12  ;;  %16 = sbr.rel (!%p14_p8) target bundleno = 5 (0x5), region = 69 }
 0x16c   :  { %200 = vsyncpa [#allocation3], 1 }
 0x16d   :  { %202 = vsyncpa [#allocation3 + $0x1], 1 }
 0x16e   :  { %203 = vsyncpa [#allocation4], 1 }
 0x16f   :  { %205 = vsyncpa [#allocation4 + $0x1], 1 }

</bundles_post_ra>
